<compile_context>
chip_gen: v7x
topology: tpu7x:2x2x1
jax: 0.10.0
libtpu: 0.0.40
codegen_flags: <defaults>
</compile_context>

<pallas_src>
import math

import jax
import jax.numpy as jnp
import numpy as np
from jax.experimental import pallas as pl
from jax.experimental.pallas import tpu as pltpu  # noqa: F401  (TPU backend)

# ---- Config (small, consistent with the module) ----
D_MODEL = 32
HEADS = 4
D_Q = D_K = D_V = 8          # heads * d_q == d_model
D_FF = 64
SEQ = 8
BATCH = 2
EPS = 1e-5                   # nn.LayerNorm default

HD = HEADS * D_Q             # 32
BS = BATCH * SEQ             # 16
HB = HEADS * BATCH           # 8

SOFTMAX_STABLE = True        # keep max-subtraction (safe for general inputs)
MXU_DTYPE = jnp.bfloat16     # matmul-operand dtype (set jnp.float32 for exact)


def encoder_layer_kernel(x_ref, wqkv_ref, wo_ref, w1_ref, w2_ref, misc_ref,
                         out_ref):
    """x_ref: (B*S, D).  Weights packed & stored in MXU_DTYPE.  out: (B*S, D)."""
    xf = x_ref[...].astype(jnp.float32)                         # (16, 32)

    misc = misc_ref[...]                                        # (8, 128) vreg
    bqkv = misc[0:1, 0:3 * HD]                                  # (1, 96)
    bo   = misc[1:2, 0:D_MODEL]                                 # (1, 32)
    bb1  = misc[2:3, 0:D_FF]                                    # (1, 64)
    bb2  = misc[3:4, 0:D_MODEL]
    g1   = misc[4:5, 0:D_MODEL]
    be1  = misc[5:6, 0:D_MODEL]
    g2   = misc[6:7, 0:D_MODEL]
    be2  = misc[7:8, 0:D_MODEL]

    # ---- Fused QKV projection (1/sqrt(d_k) already folded into Q weight/bias).
    qkv = jnp.dot(xf.astype(MXU_DTYPE), wqkv_ref[...],
                  preferred_element_type=jnp.float32) + bqkv    # (16, 96) f32

    # ---- Rearrange to head-batched (HEADS*BATCH, SEQ, dq) layout.
    # Static 8-lane slices + leading-dim reshapes + leading-axis concatenate
    # only (no 4-D transpose), so lowering stays trivially clean.
    def heads_major(base):
        parts = [qkv[:, base + h * D_Q: base + (h + 1) * D_Q]   # (16, 8)
                 .reshape(BATCH, SEQ, D_Q)                      # (2, 8, 8)
                 for h in range(HEADS)]
        return jnp.concatenate(parts, axis=0)                   # (8, 8, 8) [h*B+b]

    qh = heads_major(0)
    kh = heads_major(HD)
    vh = heads_major(2 * HD)

    # ---- Attention: one batched score einsum, ONE softmax, one ctx einsum.
    # pad_mask intentionally NOT applied (see note at top of file).
    s = jnp.einsum('bqd,bkd->bqk',
                   qh.astype(MXU_DTYPE), kh.astype(MXU_DTYPE),
                   preferred_element_type=jnp.float32)          # (8, 8, 8)
    if SOFTMAX_STABLE:
        s = s - jnp.max(s, axis=-1, keepdims=True)
    p = jnp.exp(s)
    p = p * pl.reciprocal(jnp.sum(p, axis=-1, keepdims=True), approx=True)
    ctx = jnp.einsum('bqk,bkd->bqd',
                     p.astype(MXU_DTYPE), vh.astype(MXU_DTYPE),
                     preferred_element_type=jnp.float32)        # (8, 8, 8)

    # ---- Re-concatenate heads along lanes and do ONE output projection.
    ctxcat = jnp.concatenate(
        [ctx[h * BATCH:(h + 1) * BATCH].reshape(BS, D_Q) for h in range(HEADS)],
        axis=1)                                                 # (16, 32)
    attn = jnp.dot(ctxcat.astype(MXU_DTYPE), wo_ref[...],
                   preferred_element_type=jnp.float32)          # (16, 32)

    # ---- Residual + LayerNorm 1 ----
    y = attn + bo + xf
    mu = jnp.mean(y, axis=-1, keepdims=True)
    var = jnp.mean(jnp.square(y - mu), axis=-1, keepdims=True)
    y = (y - mu) * jax.lax.rsqrt(var + EPS) * g1 + be1

    # ---- Feed forward (Conv1d k=1 == per-position linear) ----
    h1 = jnp.dot(y.astype(MXU_DTYPE), w1_ref[...],
                 preferred_element_type=jnp.float32) + bb1
    h1 = jnp.maximum(h1, 0.0)
    h2 = jnp.dot(h1.astype(MXU_DTYPE), w2_ref[...],
                 preferred_element_type=jnp.float32) + bb2

    # ---- Residual + LayerNorm 2 ----
    z = h2 + y
    mu2 = jnp.mean(z, axis=-1, keepdims=True)
    var2 = jnp.mean(jnp.square(z - mu2), axis=-1, keepdims=True)
    z = (z - mu2) * jax.lax.rsqrt(var2 + EPS) * g2 + be2

    out_ref[...] = z.astype(out_ref.dtype)


def encoder_layer(x, pad_mask, packed_params):
    """x: (B, S, D) float32.  pad_mask unused (matches reference semantics)."""
    del pad_mask  # reference masked_fill is not in-place -> no-op.
    B, S, D = x.shape
    assert (B, S, D) == (BATCH, SEQ, D_MODEL)
    wqkv, wo, w1, w2, misc = packed_params

    xf = x.reshape(B * S, D)                       # free reshape outside kernel
    out = pl.pallas_call(
        encoder_layer_kernel,
        out_shape=jax.ShapeDtypeStruct((B * S, D), x.dtype),
        # Grid-less single invocation: every operand is a whole-array VMEM
        # block (total footprint ~25 KB), so there is no per-step overhead.
    )(xf, wqkv, wo, w1, w2, misc)
    return out.reshape(B, S, D)


def make_params(key):
    """Deterministic synthetic parameters.

    Returns (packed, raw):
      packed = (wqkv, wo, w1, w2, misc)  -- kernel operands (weights in MXU_DTYPE)
      raw    = the 16 unpacked f32 tensors -- for the pure-JAX reference
    """
    ks = jax.random.split(key, 8)
    scale = 0.1
    wq = scale * jax.random.normal(ks[0], (D_MODEL, HD), jnp.float32)
    wk = scale * jax.random.normal(ks[1], (D_MODEL, HD), jnp.float32)
    wv = scale * jax.random.normal(ks[2], (D_MODEL, HD), jnp.float32)
    wo = scale * jax.random.normal(ks[3], (HD, D_MODEL), jnp.float32)
    bq = scale * jax.random.normal(ks[4], (1, HD), jnp.float32)
    bk = scale * jax.random.normal(ks[5], (1, HD), jnp.float32)
    bv = scale * jax.random.normal(ks[6], (1, HD), jnp.float32)
    bo = scale * jax.random.normal(ks[7], (1, D_MODEL), jnp.float32)
    g1 = jnp.ones((1, D_MODEL), jnp.float32)
    be1 = jnp.zeros((1, D_MODEL), jnp.float32)

    ks2 = jax.random.split(jax.random.fold_in(key, 1), 4)
    # Conv1d weights (d_ff, d_model, 1) / (d_model, d_ff, 1) stored pre-transposed.
    w1 = scale * jax.random.normal(ks2[0], (D_MODEL, D_FF), jnp.float32)
    bb1 = scale * jax.random.normal(ks2[1], (1, D_FF), jnp.float32)
    w2 = scale * jax.random.normal(ks2[2], (D_FF, D_MODEL), jnp.float32)
    bb2 = scale * jax.random.normal(ks2[3], (1, D_MODEL), jnp.float32)
    g2 = jnp.ones((1, D_MODEL), jnp.float32)
    be2 = jnp.zeros((1, D_MODEL), jnp.float32)

    # ---- Pack for the kernel ----
    att_scale = 1.0 / math.sqrt(D_K)
    wqkv = jnp.concatenate([wq * att_scale, wk, wv], axis=1)     # (32, 96)
    misc = jnp.zeros((8, 128), jnp.float32)
    misc = misc.at[0, 0:3 * HD].set(
        jnp.concatenate([bq[0] * att_scale, bk[0], bv[0]]))
    misc = misc.at[1, 0:D_MODEL].set(bo[0])
    misc = misc.at[2, 0:D_FF].set(bb1[0])
    misc = misc.at[3, 0:D_MODEL].set(bb2[0])
    misc = misc.at[4, 0:D_MODEL].set(g1[0])
    misc = misc.at[5, 0:D_MODEL].set(be1[0])
    misc = misc.at[6, 0:D_MODEL].set(g2[0])
    misc = misc.at[7, 0:D_MODEL].set(be2[0])

    packed = (wqkv.astype(MXU_DTYPE), wo.astype(MXU_DTYPE),
              w1.astype(MXU_DTYPE), w2.astype(MXU_DTYPE), misc)
    raw = (wq, bq, wk, bk, wv, bv, wo, bo, g1, be1,
           w1, bb1, w2, bb2, g2, be2)
    return packed, raw


def reference(x, raw_params):
    """Pure-JAX f32 reference (uses the raw, un-folded parameters)."""
    (wq, bq, wk, bk, wv, bv, wo, bo, g1, be1,
     w1, bb1, w2, bb2, g2, be2) = raw_params
    B, S, D = x.shape
    q = (x @ wq + bq).reshape(B, S, HEADS, D_Q).transpose(0, 2, 1, 3)
    k = (x @ wk + bk).reshape(B, S, HEADS, D_K).transpose(0, 2, 1, 3)
    v = (x @ wv + bv).reshape(B, S, HEADS, D_V).transpose(0, 2, 1, 3)
    att = jnp.einsum("bhqd,bhkd->bhqk", q, k) / math.sqrt(D_K)
    att = jax.nn.softmax(att, axis=-1)
    ctx = jnp.einsum("bhqk,bhkd->bhqd", att, v)
    ctx = ctx.transpose(0, 2, 1, 3).reshape(B, S, HEADS * D_V)
    y = ctx @ wo + bo + x
    y = (y - y.mean(-1, keepdims=True)) * jax.lax.rsqrt(
        y.var(-1, keepdims=True) + EPS) * g1 + be1
    h = jnp.maximum(y @ w1 + bb1, 0.0)
    z = h @ w2 + bb2 + y
    z = (z - z.mean(-1, keepdims=True)) * jax.lax.rsqrt(
        z.var(-1, keepdims=True) + EPS) * g2 + be2
    return z


if __name__ == "__main__":
    key = jax.random.PRNGKey(0)
    kx, kp = jax.random.split(key)
    x = jax.random.normal(kx, (BATCH, SEQ, D_MODEL), jnp.float32)
    pad_mask = jnp.zeros((BATCH, SEQ, SEQ), jnp.bool_)  # unused (see note)
    # Guard: the kernel ignores the mask (matching the reference's non-in-place
    # masked_fill).  Make sure the test inputs are consistent with that.
    assert not bool(np.any(np.asarray(pad_mask))), "kernel assumes all-False pad_mask"

    packed, raw = make_params(kp)

    out = encoder_layer(x, pad_mask, packed)
    out = jax.block_until_ready(out)

    ref = reference(x, raw)
    # Tolerance: bf16 MXU operands contribute ~0.4% relative error per matmul
    # operand (plus ~1e-4 from pl.reciprocal(approx=True) in the softmax);
    # after two LayerNorms the observed deviation vs the f32 reference is
    # ~1e-2 absolute.  Use 2e-3 when MXU_DTYPE is float32.
    tol = 5e-2 if MXU_DTYPE == jnp.bfloat16 else 2e-3
    np.testing.assert_allclose(np.asarray(out), np.asarray(ref),
                               rtol=tol, atol=tol)
    print("KERNEL_OK")
</pallas_src>

<mosaic_0001>
module attributes {stable_mosaic.version = 11 : i64} {
  func.func @encoder_layer_kernel(%arg0: memref<16x32xf32, #tpu.memory_space<vmem>>, %arg1: memref<32x96xbf16, #tpu.memory_space<vmem>>, %arg2: memref<32x32xbf16, #tpu.memory_space<vmem>>, %arg3: memref<32x64xbf16, #tpu.memory_space<vmem>>, %arg4: memref<64x32xbf16, #tpu.memory_space<vmem>>, %arg5: memref<8x128xf32, #tpu.memory_space<vmem>>, %arg6: memref<16x32xf32, #tpu.memory_space<vmem>>) attributes {dimension_semantics = [], scalar_prefetch = 0 : i64, scratch_operands = 0 : i64, tpu.core_type = #tpu.core_type<tc>} {
    %c0 = arith.constant 0 : index
    %c0_0 = arith.constant 0 : index
    %0 = vector.load %arg0[%c0, %c0_0] : memref<16x32xf32, #tpu.memory_space<vmem>>, vector<16x32xf32>
    %c0_1 = arith.constant 0 : index
    %c0_2 = arith.constant 0 : index
    %1 = vector.load %arg5[%c0_1, %c0_2] : memref<8x128xf32, #tpu.memory_space<vmem>>, vector<8x128xf32>
    %2 = vector.extract_strided_slice %1 {offsets = [0, 0], sizes = [1, 96], strides = [1, 1]} : vector<8x128xf32> to vector<1x96xf32>
    %3 = vector.extract_strided_slice %1 {offsets = [1, 0], sizes = [1, 32], strides = [1, 1]} : vector<8x128xf32> to vector<1x32xf32>
    %4 = vector.extract_strided_slice %1 {offsets = [2, 0], sizes = [1, 64], strides = [1, 1]} : vector<8x128xf32> to vector<1x64xf32>
    %5 = vector.extract_strided_slice %1 {offsets = [3, 0], sizes = [1, 32], strides = [1, 1]} : vector<8x128xf32> to vector<1x32xf32>
    %6 = vector.extract_strided_slice %1 {offsets = [4, 0], sizes = [1, 32], strides = [1, 1]} : vector<8x128xf32> to vector<1x32xf32>
    %7 = vector.extract_strided_slice %1 {offsets = [5, 0], sizes = [1, 32], strides = [1, 1]} : vector<8x128xf32> to vector<1x32xf32>
    %8 = vector.extract_strided_slice %1 {offsets = [6, 0], sizes = [1, 32], strides = [1, 1]} : vector<8x128xf32> to vector<1x32xf32>
    %9 = vector.extract_strided_slice %1 {offsets = [7, 0], sizes = [1, 32], strides = [1, 1]} : vector<8x128xf32> to vector<1x32xf32>
    %10 = arith.truncf %0 : vector<16x32xf32> to vector<16x32xbf16>
    %c0_3 = arith.constant 0 : index
    %c0_4 = arith.constant 0 : index
    %11 = vector.load %arg1[%c0_3, %c0_4] : memref<32x96xbf16, #tpu.memory_space<vmem>>, vector<32x96xbf16>
    %cst = arith.constant dense<0.000000e+00> : vector<16x96xf32>
    %12 = tpu.matmul %10, %11, %cst {dimension_numbers = #tpu.dot_dimension_numbers<[1], [0], [0], [1], [0, 0, 1, 1], [], []>} : vector<16x32xbf16>, vector<32x96xbf16>, vector<16x96xf32> -> vector<16x96xf32>
    %13 = vector.broadcast %2 : vector<1x96xf32> to vector<16x96xf32>
    %14 = arith.addf %12, %13 : vector<16x96xf32>
    %15 = vector.extract_strided_slice %14 {offsets = [0, 0], sizes = [16, 8], strides = [1, 1]} : vector<16x96xf32> to vector<16x8xf32>
    %16 = vector.shape_cast %15 : vector<16x8xf32> to vector<2x8x8xf32>
    %17 = vector.extract_strided_slice %14 {offsets = [0, 8], sizes = [16, 8], strides = [1, 1]} : vector<16x96xf32> to vector<16x8xf32>
    %18 = vector.shape_cast %17 : vector<16x8xf32> to vector<2x8x8xf32>
    %19 = vector.extract_strided_slice %14 {offsets = [0, 16], sizes = [16, 8], strides = [1, 1]} : vector<16x96xf32> to vector<16x8xf32>
    %20 = vector.shape_cast %19 : vector<16x8xf32> to vector<2x8x8xf32>
    %21 = vector.extract_strided_slice %14 {offsets = [0, 24], sizes = [16, 8], strides = [1, 1]} : vector<16x96xf32> to vector<16x8xf32>
    %22 = vector.shape_cast %21 : vector<16x8xf32> to vector<2x8x8xf32>
    %23 = tpu.concatenate %16, %18, %20, %22 in 0 : vector<2x8x8xf32>, vector<2x8x8xf32>, vector<2x8x8xf32>, vector<2x8x8xf32> -> vector<8x8x8xf32>
    %24 = vector.extract_strided_slice %14 {offsets = [0, 32], sizes = [16, 8], strides = [1, 1]} : vector<16x96xf32> to vector<16x8xf32>
    %25 = vector.shape_cast %24 : vector<16x8xf32> to vector<2x8x8xf32>
    %26 = vector.extract_strided_slice %14 {offsets = [0, 40], sizes = [16, 8], strides = [1, 1]} : vector<16x96xf32> to vector<16x8xf32>
    %27 = vector.shape_cast %26 : vector<16x8xf32> to vector<2x8x8xf32>
    %28 = vector.extract_strided_slice %14 {offsets = [0, 48], sizes = [16, 8], strides = [1, 1]} : vector<16x96xf32> to vector<16x8xf32>
    %29 = vector.shape_cast %28 : vector<16x8xf32> to vector<2x8x8xf32>
    %30 = vector.extract_strided_slice %14 {offsets = [0, 56], sizes = [16, 8], strides = [1, 1]} : vector<16x96xf32> to vector<16x8xf32>
    %31 = vector.shape_cast %30 : vector<16x8xf32> to vector<2x8x8xf32>
    %32 = tpu.concatenate %25, %27, %29, %31 in 0 : vector<2x8x8xf32>, vector<2x8x8xf32>, vector<2x8x8xf32>, vector<2x8x8xf32> -> vector<8x8x8xf32>
    %33 = vector.extract_strided_slice %14 {offsets = [0, 64], sizes = [16, 8], strides = [1, 1]} : vector<16x96xf32> to vector<16x8xf32>
    %34 = vector.shape_cast %33 : vector<16x8xf32> to vector<2x8x8xf32>
    %35 = vector.extract_strided_slice %14 {offsets = [0, 72], sizes = [16, 8], strides = [1, 1]} : vector<16x96xf32> to vector<16x8xf32>
    %36 = vector.shape_cast %35 : vector<16x8xf32> to vector<2x8x8xf32>
    %37 = vector.extract_strided_slice %14 {offsets = [0, 80], sizes = [16, 8], strides = [1, 1]} : vector<16x96xf32> to vector<16x8xf32>
    %38 = vector.shape_cast %37 : vector<16x8xf32> to vector<2x8x8xf32>
    %39 = vector.extract_strided_slice %14 {offsets = [0, 88], sizes = [16, 8], strides = [1, 1]} : vector<16x96xf32> to vector<16x8xf32>
    %40 = vector.shape_cast %39 : vector<16x8xf32> to vector<2x8x8xf32>
    %41 = tpu.concatenate %34, %36, %38, %40 in 0 : vector<2x8x8xf32>, vector<2x8x8xf32>, vector<2x8x8xf32>, vector<2x8x8xf32> -> vector<8x8x8xf32>
    %42 = arith.truncf %23 : vector<8x8x8xf32> to vector<8x8x8xbf16>
    %43 = arith.truncf %32 : vector<8x8x8xf32> to vector<8x8x8xbf16>
    "tpu.trace_start"() <{level = 10 : i32, message = "bqd,bkd->bqk"}> : () -> ()
    %cst_5 = arith.constant dense<0.000000e+00> : vector<8x8x8xf32>
    %44 = tpu.matmul %42, %43, %cst_5 {dimension_numbers = #tpu.dot_dimension_numbers<[2], [2], [1], [1], [0, 0, 0, 1, 1, 1], [0], [0]>} : vector<8x8x8xbf16>, vector<8x8x8xbf16>, vector<8x8x8xf32> -> vector<8x8x8xf32>
    "tpu.trace_stop"() : () -> ()
    %cst_6 = arith.constant dense<0xFF800000> : vector<8x8xf32>
    %45 = vector.multi_reduction <maximumf>, %44, %cst_6 [2] : vector<8x8x8xf32> to vector<8x8xf32>
    %46 = vector.shape_cast %45 : vector<8x8xf32> to vector<8x8x1xf32>
    %47 = vector.broadcast %46 : vector<8x8x1xf32> to vector<8x8x8xf32>
    %48 = arith.subf %44, %47 : vector<8x8x8xf32>
    %49 = math.exp %48 : vector<8x8x8xf32>
    %cst_7 = arith.constant dense<0.000000e+00> : vector<8x8xf32>
    %50 = vector.multi_reduction <add>, %49, %cst_7 [2] : vector<8x8x8xf32> to vector<8x8xf32>
    %51 = vector.shape_cast %50 : vector<8x8xf32> to vector<8x8x1xf32>
    %52 = tpu.reciprocal %51 {approx = true} : vector<8x8x1xf32> -> vector<8x8x1xf32>
    %53 = vector.broadcast %52 : vector<8x8x1xf32> to vector<8x8x8xf32>
    %54 = arith.mulf %49, %53 : vector<8x8x8xf32>
    %55 = arith.truncf %54 : vector<8x8x8xf32> to vector<8x8x8xbf16>
    %56 = arith.truncf %41 : vector<8x8x8xf32> to vector<8x8x8xbf16>
    "tpu.trace_start"() <{level = 10 : i32, message = "bqk,bkd->bqd"}> : () -> ()
    %cst_8 = arith.constant dense<0.000000e+00> : vector<8x8x8xf32>
    %57 = tpu.matmul %55, %56, %cst_8 {dimension_numbers = #tpu.dot_dimension_numbers<[2], [1], [1], [2], [0, 0, 0, 1, 1, 2], [0], [0]>} : vector<8x8x8xbf16>, vector<8x8x8xbf16>, vector<8x8x8xf32> -> vector<8x8x8xf32>
    "tpu.trace_stop"() : () -> ()
    %58 = vector.extract_strided_slice %57 {offsets = [0, 0, 0], sizes = [2, 8, 8], strides = [1, 1, 1]} : vector<8x8x8xf32> to vector<2x8x8xf32>
    %59 = vector.shape_cast %58 : vector<2x8x8xf32> to vector<16x8xf32>
    %60 = vector.extract_strided_slice %57 {offsets = [2, 0, 0], sizes = [2, 8, 8], strides = [1, 1, 1]} : vector<8x8x8xf32> to vector<2x8x8xf32>
    %61 = vector.shape_cast %60 : vector<2x8x8xf32> to vector<16x8xf32>
    %62 = vector.extract_strided_slice %57 {offsets = [4, 0, 0], sizes = [2, 8, 8], strides = [1, 1, 1]} : vector<8x8x8xf32> to vector<2x8x8xf32>
    %63 = vector.shape_cast %62 : vector<2x8x8xf32> to vector<16x8xf32>
    %64 = vector.extract_strided_slice %57 {offsets = [6, 0, 0], sizes = [2, 8, 8], strides = [1, 1, 1]} : vector<8x8x8xf32> to vector<2x8x8xf32>
    %65 = vector.shape_cast %64 : vector<2x8x8xf32> to vector<16x8xf32>
    %66 = tpu.concatenate %59, %61, %63, %65 in 1 : vector<16x8xf32>, vector<16x8xf32>, vector<16x8xf32>, vector<16x8xf32> -> vector<16x32xf32>
    %67 = arith.truncf %66 : vector<16x32xf32> to vector<16x32xbf16>
    %c0_9 = arith.constant 0 : index
    %c0_10 = arith.constant 0 : index
    %68 = vector.load %arg2[%c0_9, %c0_10] : memref<32x32xbf16, #tpu.memory_space<vmem>>, vector<32x32xbf16>
    %cst_11 = arith.constant dense<0.000000e+00> : vector<16x32xf32>
    %69 = tpu.matmul %67, %68, %cst_11 {dimension_numbers = #tpu.dot_dimension_numbers<[1], [0], [0], [1], [0, 0, 1, 1], [], []>} : vector<16x32xbf16>, vector<32x32xbf16>, vector<16x32xf32> -> vector<16x32xf32>
    %70 = vector.broadcast %3 : vector<1x32xf32> to vector<16x32xf32>
    %71 = arith.addf %69, %70 : vector<16x32xf32>
    %72 = arith.addf %71, %0 : vector<16x32xf32>
    %cst_12 = arith.constant dense<0.000000e+00> : vector<16xf32>
    %73 = vector.multi_reduction <add>, %72, %cst_12 [1] : vector<16x32xf32> to vector<16xf32>
    %74 = vector.shape_cast %73 : vector<16xf32> to vector<16x1xf32>
    %cst_13 = arith.constant 3.200000e+01 : f32
    %75 = vector.broadcast %cst_13 : f32 to vector<16x1xf32>
    %76 = arith.divf %74, %75 : vector<16x1xf32>
    %77 = vector.broadcast %76 : vector<16x1xf32> to vector<16x32xf32>
    %78 = arith.subf %72, %77 : vector<16x32xf32>
    %79 = arith.mulf %78, %78 : vector<16x32xf32>
    %cst_14 = arith.constant dense<0.000000e+00> : vector<16xf32>
    %80 = vector.multi_reduction <add>, %79, %cst_14 [1] : vector<16x32xf32> to vector<16xf32>
    %81 = vector.shape_cast %80 : vector<16xf32> to vector<16x1xf32>
    %cst_15 = arith.constant 3.200000e+01 : f32
    %82 = vector.broadcast %cst_15 : f32 to vector<16x1xf32>
    %83 = arith.divf %81, %82 : vector<16x1xf32>
    %84 = vector.broadcast %76 : vector<16x1xf32> to vector<16x32xf32>
    %85 = arith.subf %72, %84 : vector<16x32xf32>
    %cst_16 = arith.constant 9.99999974E-6 : f32
    %86 = vector.broadcast %cst_16 : f32 to vector<16x1xf32>
    %87 = arith.addf %83, %86 : vector<16x1xf32>
    %88 = math.rsqrt %87 : vector<16x1xf32>
    %89 = vector.broadcast %88 : vector<16x1xf32> to vector<16x32xf32>
    %90 = arith.mulf %85, %89 : vector<16x32xf32>
    %91 = vector.broadcast %6 : vector<1x32xf32> to vector<16x32xf32>
    %92 = arith.mulf %90, %91 : vector<16x32xf32>
    %93 = vector.broadcast %7 : vector<1x32xf32> to vector<16x32xf32>
    %94 = arith.addf %92, %93 : vector<16x32xf32>
    %95 = arith.truncf %94 : vector<16x32xf32> to vector<16x32xbf16>
    %c0_17 = arith.constant 0 : index
    %c0_18 = arith.constant 0 : index
    %96 = vector.load %arg3[%c0_17, %c0_18] : memref<32x64xbf16, #tpu.memory_space<vmem>>, vector<32x64xbf16>
    %cst_19 = arith.constant dense<0.000000e+00> : vector<16x64xf32>
    %97 = tpu.matmul %95, %96, %cst_19 {dimension_numbers = #tpu.dot_dimension_numbers<[1], [0], [0], [1], [0, 0, 1, 1], [], []>} : vector<16x32xbf16>, vector<32x64xbf16>, vector<16x64xf32> -> vector<16x64xf32>
    %98 = vector.broadcast %4 : vector<1x64xf32> to vector<16x64xf32>
    %99 = arith.addf %97, %98 : vector<16x64xf32>
    %cst_20 = arith.constant 0.000000e+00 : f32
    %100 = vector.broadcast %cst_20 : f32 to vector<16x64xf32>
    %101 = arith.maximumf %99, %100 : vector<16x64xf32>
    %102 = arith.truncf %101 : vector<16x64xf32> to vector<16x64xbf16>
    %c0_21 = arith.constant 0 : index
    %c0_22 = arith.constant 0 : index
    %103 = vector.load %arg4[%c0_21, %c0_22] : memref<64x32xbf16, #tpu.memory_space<vmem>>, vector<64x32xbf16>
    %cst_23 = arith.constant dense<0.000000e+00> : vector<16x32xf32>
    %104 = tpu.matmul %102, %103, %cst_23 {dimension_numbers = #tpu.dot_dimension_numbers<[1], [0], [0], [1], [0, 0, 1, 1], [], []>} : vector<16x64xbf16>, vector<64x32xbf16>, vector<16x32xf32> -> vector<16x32xf32>
    %105 = vector.broadcast %5 : vector<1x32xf32> to vector<16x32xf32>
    %106 = arith.addf %104, %105 : vector<16x32xf32>
    %107 = arith.addf %106, %94 : vector<16x32xf32>
    %cst_24 = arith.constant dense<0.000000e+00> : vector<16xf32>
    %108 = vector.multi_reduction <add>, %107, %cst_24 [1] : vector<16x32xf32> to vector<16xf32>
    %109 = vector.shape_cast %108 : vector<16xf32> to vector<16x1xf32>
    %cst_25 = arith.constant 3.200000e+01 : f32
    %110 = vector.broadcast %cst_25 : f32 to vector<16x1xf32>
    %111 = arith.divf %109, %110 : vector<16x1xf32>
    %112 = vector.broadcast %111 : vector<16x1xf32> to vector<16x32xf32>
    %113 = arith.subf %107, %112 : vector<16x32xf32>
    %114 = arith.mulf %113, %113 : vector<16x32xf32>
    %cst_26 = arith.constant dense<0.000000e+00> : vector<16xf32>
    %115 = vector.multi_reduction <add>, %114, %cst_26 [1] : vector<16x32xf32> to vector<16xf32>
    %116 = vector.shape_cast %115 : vector<16xf32> to vector<16x1xf32>
    %cst_27 = arith.constant 3.200000e+01 : f32
    %117 = vector.broadcast %cst_27 : f32 to vector<16x1xf32>
    %118 = arith.divf %116, %117 : vector<16x1xf32>
    %119 = vector.broadcast %111 : vector<16x1xf32> to vector<16x32xf32>
    %120 = arith.subf %107, %119 : vector<16x32xf32>
    %cst_28 = arith.constant 9.99999974E-6 : f32
    %121 = vector.broadcast %cst_28 : f32 to vector<16x1xf32>
    %122 = arith.addf %118, %121 : vector<16x1xf32>
    %123 = math.rsqrt %122 : vector<16x1xf32>
    %124 = vector.broadcast %123 : vector<16x1xf32> to vector<16x32xf32>
    %125 = arith.mulf %120, %124 : vector<16x32xf32>
    %126 = vector.broadcast %8 : vector<1x32xf32> to vector<16x32xf32>
    %127 = arith.mulf %125, %126 : vector<16x32xf32>
    %128 = vector.broadcast %9 : vector<1x32xf32> to vector<16x32xf32>
    %129 = arith.addf %127, %128 : vector<16x32xf32>
    %c0_29 = arith.constant 0 : index
    %c0_30 = arith.constant 0 : index
    %130 = vector.load %arg6[%c0_29, %c0_30] : memref<16x32xf32, #tpu.memory_space<vmem>>, vector<16x32xf32>
    tpu.vector_store %arg6[%c0_29, %c0_30], %129 {strides = array<i32>} : memref<16x32xf32, #tpu.memory_space<vmem>>, vector<16x32xf32>,
    return
  }
}

</mosaic_0001>

<bundles_post_ra>
// kernel: tpu_custom_call.1
= control target key start
LH: loop header
LB: loop body
LE: loop exit
PB: predicated region body
PF: predicated region fallthrough
CT: control target
= control target key end

     0   :  { %11 = vsyncpa [#allocation3], 0  ;;  %s2051_s0 = inlined_call_operand.vmem [shape: f32[16,32], index: 0, kind: input, shape index: {}]   ;;  %s2052_s1 = inlined_call_operand.vmem [shape: bf16[32,96], index: 1, kind: input, shape index: {}]   ;;  %s2053_s2 = inlined_call_operand.vmem [shape: bf16[32,32], index: 2, kind: input, shape index: {}]   ;;  %s2054_s3 = inlined_call_operand.hbm [shape: bf16[32,64], index: 3, kind: input, shape index: {}]   ;;  %s2055_s4 = inlined_call_operand.vmem [shape: bf16[64,32], index: 4, kind: input, shape index: {}]   ;;  %s2056_s5 = inlined_call_operand.vmem [shape: f32[8,128], index: 5, kind: input, shape index: {}]   ;;  %s2057_s6 = inlined_call_operand.hbm [shape: f32[16,32], index: 6, kind: output, shape index: {}]  }
   0x1   :  { %12 = vsyncpa [#allocation4], 0  ;;  %s1706_s21 = smov [#allocation2]   ;;  %s1658_s25 = scalar_lea.hbm %s2054_s3, 256 }
   0x2   :  { %s24_s22 = sshll.u32 %s1706_s21, 4  ;;  %p1659_p0 = scmp.ne.s32.totalorder %s2054_s3, %s1658_s25  ;;  %s25_s22 = int_to_ptr.vmem [resolvable:$true] %s24_s22 }
   0x3   :  { %p1662_p1 = scmp.lt.u32.totalorder %s1658_s25, %s2054_s3 }
   0x5   :  { %p1664_p2 = pnand %p1662_p1, %p1659_p0 }
   0x7   :  { %1667 = shalt.err (!%p1664_p2)
}
   0x8   :  { %s1668_s30 = scalar_lea.vmem %s25_s22, 256  ;;  %p1673_p4 = scmp.lt.s32.totalorder %s25_s22, %s25_s22 }
   0x9   :  { %p1669_p3 = scmp.ne.s32.totalorder %s25_s22, %s1668_s30  ;;  %p1674_p5 = scmp.lt.s32.totalorder %s1668_s30, %s1668_s30 }
   0xb   :  { %p1675_p6 = por %p1674_p5, %p1673_p4 }
   0xd   :  { %p1676_p7 = pnand %p1675_p6, %p1669_p3 }
   0xf   :  { %1679 = shalt.err (!%p1676_p7)
}
  0x10   :  { %s1707_s7 = smov 64   ;;  %s1708_s8 = smov 4  }
  0x11   :  { %30 = dma.hbm_to_vmem [thread:$0]  %s2054_s3, 256, %s25_s22, [#allocation3], %s1707_s7, %s1707_s7, %s1708_s8  }
  0x12   :  { %1702 = dma.done.wait [#allocation3], 256  }
  0x13   :  { %1703 = vsyncadd [#allocation3], 4294967040  ;;  %v1709_v0 = vmov 0.0   ;;  %vm1710_vm0 = vmmov 0   ;;  %v1608_v1 = vld [vmem:[%s2052_s1] sm:$0xff]   ;;  %v1609_v2 = vld [vmem:[%s2052_s1 + $0x8] sm:$0xff]   ;;  %v47_v6 = vlaneseq }
  0x14   :  { %1432 = vmatprep.subr.bf16.mxu0 %v1709_v0  ;;  %1436 = vmatprep.mubr.msk.bf16.mxu0 %vm1710_vm0, %v1709_v0  ;;  %v1784_v3 = vld [vmem:[%s2051_s0] sm:$0xff]  ;;  %v1789_v4 = vld [vmem:[%s2051_s0 + $0x8] sm:$0xff]  ;;  %vm63_vm1 = vcmask 261120   ;;  %s1711_s18 = smov 104   ;;  %s1712_s19 = smov 120   ;;  %vm139_vm2 = vcmask 64512  }
  0x15   :  { %1440 = vmatprep.subr.bf16.mxu1 %v1709_v0  ;;  %1442 = vmatprep.mubr.msk.bf16.mxu1 %vm1710_vm0, %v1709_v0  ;;  %v42_v5 = vpack.c.bf16 %v1789_v4, %v1784_v3  ;;  %v1798_v7 = vshrl.u32 %v47_v6, 7  ;;  %v1804_v9 = vld [vmem:[%s2056_s5] sm:$0xff]  ;;  %s1713_s20 = smov 96   ;;  %s1714_s21 = smov 112   ;;  %vm630_vm3 = vcmask 1043456   ;;  %vm1036_vm4 = vcmask 130048  }
  0x16   :  { %1433 = vmatpush3.bf16.msra.mxu0 %v1608_v1  ;;  %s1715_s5 = smov 8   ;;  %s1716_s26 = smov 16   ;;  %vm1039_vm5 = vcmask 195584   ;;  %vm1252_vm6 = vcmask 523264  }
  0x17   :  { %1434 = vmatprep.subr.bf16.mxu0 %v1709_v0  ;;  %v49_v8 = vsub.s32 0, %v1798_v7  ;;  %s1717_s27 = smov 24  }
  0x19   :  { %v50_v10 = vrot.slane %v1804_v9, %v49_v8 }
  0x1a   :  { %1435 = vmatpush3.bf16.msra.mxu0 %v1609_v2 }
  0x1b   :  { %1446 = vmatprep.subr.bf16.mxu0 %v1709_v0 }
  0x1d   :  { %1437 = vmatmul.mubr.msk.bf16.vlgmr.msra.gmra.mrb[0].mxu0 %vm63_vm1, %v42_v5 }
  0x1e   :  { %1448 = vmatprep.mubr.msk.bf16.mxu0 %vm1710_vm0, %v1709_v0 }
  0xf0   :  { %v101_v11 = vpop.f32.mrb[0].mxu0 }
  0xf1   :  { %v1438_v12 = vpop.f32.mrb[1].mxu0  ;;  %v102_v14 = vadd.f32 %v101_v11, %v50_v10 }
  0xf2   :  { %v104_v13 = vpop.f32.mrb[2].mxu0 }
  0xf3   :  { %v105_v15 = vadd.f32 %v104_v13, %v50_v10  ;;  %v1439_v16 = vpop.f32.mrb[3].mxu0  ;;  %v128_v18 = vpack.c.bf16 %v102_v14, %v102_v14 }
  0xf5   :  { %v1588_v17 = vpack.i.bf16 %v105_v15, %v102_v14  ;;  %v129_v19 = vpack.c.bf16 %v105_v15, %v105_v15 }
  0xf7   :  { %1589 = vrot.lane.b32.xlu1 %v1588_v17, %s1711_s18  ;;  %1579 = vrot.lane.b32.xlu0 %v1588_v17, %s1712_s19 }
  0xfb   :  { %137 = vrot.lane.b32.xlu1 %v128_v18, %s1713_s20  ;;  %1584 = vrot.lane.b32.xlu0 %v1588_v17, %s1714_s21 }
  0xff   :  { %187 = vrot.lane.b32.xlu0 %v129_v19, %s1713_s20 }
 0x169   :  { %v1590_v20 = vpop.permute.xlu1 %1589  ;;  %v1580_v21 = vpop.permute.xlu0 %1579 }
 0x16a   :  { %v1582_v22 = vunpack.i.h.bf16 %v1580_v21  ;;  %v1581_v23 = vunpack.i.l.bf16 %v1580_v21  ;;  %v1591_v31 = vunpack.i.l.bf16 %v1590_v20  ;;  %v1592_v34 = vunpack.i.h.bf16 %v1590_v20 }
 0x16c   :  { %v1809_v24 = vpack.c.bf16 %v1582_v22, %v1582_v22  ;;  %v1811_v25 = vpack.c.bf16 %v1581_v23, %v1581_v23  ;;  %v1828_v37 = vpack.c.bf16 %v1591_v31, %v1591_v31  ;;  %v1831_v38 = vpack.c.bf16 %v1592_v34, %v1592_v34 }
 0x16d   :  { %v138_v26 = vpop.permute.xlu1 %137  ;;  %v1585_v27 = vpop.permute.xlu0 %1584 }
 0x16e   :  { %v1587_v28 = vunpack.i.h.bf16 %v1585_v27  ;;  %v1586_v29 = vunpack.i.l.bf16 %v1585_v27  ;;  %236 = vrot.lane.b32.xlu1 %v1811_v25, %s1713_s20  ;;  %285 = vrot.lane.b32.xlu0 %v1809_v24, %s1713_s20  ;;  %v144_v30 = vsel %vm139_vm2, %v138_v26, 0 }
 0x16f   :  { %1441 = vmatpush3.bf16.xpose.msra.mxu1 %v144_v30 }
 0x170   :  { %v1818_v32 = vpack.c.bf16 %v1587_v28, %v1587_v28  ;;  %v1820_v33 = vpack.c.bf16 %v1586_v29, %v1586_v29  ;;  %1452 = vmatprep.subr.bf16.mxu1 %v1709_v0 }
 0x171   :  { %v188_v35 = vpop.permute.xlu0 %187 }
 0x172   :  { %v193_v36 = vsel %vm139_vm2, %v188_v35, 0  ;;  %334 = vrot.lane.b32.xlu1 %v1820_v33, %s1713_s20  ;;  %383 = vrot.lane.b32.xlu0 %v1818_v32, %s1713_s20 }
 0x173   :  { %1447 = vmatpush3.bf16.xpose.msra.mxu0 %v193_v36 }
 0x174   :  { %1458 = vmatprep.subr.bf16.mxu0 %v1709_v0 }
 0x176   :  { %1443 = vmatmul.mubr.msk.bf16.vlgmr.msra.gmra.mrb[0].mxu1 %vm139_vm2, %v128_v18  ;;  %432 = vrot.lane.b32.xlu1 %v1828_v37, %s1713_s20 }
 0x177   :  { %481 = vrot.lane.b32.xlu0 %v1831_v38, %s1713_s20  ;;  %1454 = vmatprep.mubr.msk.bf16.mxu1 %vm1710_vm0, %v1709_v0 }
 0x17a   :  { %674 = vrot.lane.b32.xlu1 %v129_v19, %s1707_s7  ;;  %1449 = vmatmul.mubr.msk.bf16.vlgmr.msra.gmra.mrb[4].mxu0 %vm139_vm2, %v129_v19 }
 0x17b   :  { %625 = vrot.lane.b32.xlu0 %v128_v18, %s1707_s7  ;;  %1460 = vmatprep.mubr.msk.bf16.mxu0 %vm1710_vm0, %v1709_v0 }
 0x1e0   :  { %v237_v39 = vpop.permute.xlu1 %236  ;;  %v286_v40 = vpop.permute.xlu0 %285 }
 0x1e1   :  { %v242_v41 = vsel %vm139_vm2, %v237_v39, 0  ;;  %v291_v42 = vsel %vm139_vm2, %v286_v40, 0 }
 0x1e2   :  { %1453 = vmatpush3.bf16.xpose.msra.mxu1 %v242_v41  ;;  %1459 = vmatpush3.bf16.xpose.msra.mxu0 %v291_v42 }
 0x1e3   :  { %1464 = vmatprep.subr.bf16.mxu1 %v1709_v0  ;;  %1470 = vmatprep.subr.bf16.mxu0 %v1709_v0 }
 0x1e4   :  { %v335_v43 = vpop.permute.xlu1 %334  ;;  %v384_v44 = vpop.permute.xlu0 %383 }
 0x1e5   :  { %v340_v45 = vsel %vm139_vm2, %v335_v43, 0  ;;  %v389_v46 = vsel %vm139_vm2, %v384_v44, 0 }
 0x1e8   :  { %v433_v47 = vpop.permute.xlu1 %432 }
 0x1e9   :  { %1455 = vmatmul.mubr.msk.bf16.vlgmr.msra.gmra.mrb[4].mxu1 %vm139_vm2, %v1811_v25  ;;  %1461 = vmatmul.mubr.msk.bf16.vlgmr.msra.gmra.mrb[8].mxu0 %vm139_vm2, %v1809_v24  ;;  %v482_v48 = vpop.permute.xlu0 %481  ;;  %v438_v49 = vsel %vm139_vm2, %v433_v47, 0 }
 0x1ea   :  { %1465 = vmatpush3.bf16.xpose.msra.mxu1 %v340_v45  ;;  %1471 = vmatpush3.bf16.xpose.msra.mxu0 %v389_v46  ;;  %v487_v50 = vsel %vm139_vm2, %v482_v48, 0 }
 0x1eb   :  { %1466 = vmatprep.mubr.msk.bf16.mxu1 %vm1710_vm0, %v1709_v0  ;;  %1472 = vmatprep.mubr.msk.bf16.mxu0 %vm1710_vm0, %v1709_v0 }
 0x1ec   :  { %1476 = vmatprep.subr.bf16.mxu1 %v1709_v0  ;;  %1482 = vmatprep.subr.bf16.mxu0 %v1709_v0  ;;  %v675_v51 = vpop.permute.xlu1 %674 }
 0x1ed   :  { %v626_v52 = vpop.permute.xlu0 %625  ;;  %v680_v53 = vsel %vm630_vm3, %v675_v51, 0 }
 0x1ee   :  { %v632_v54 = vsel %vm630_vm3, %v626_v52, 0 }
 0x1f1   :  { %1467 = vmatmul.mubr.msk.bf16.vlgmr.msra.gmra.mrb[8].mxu1 %vm139_vm2, %v1820_v33  ;;  %1473 = vmatmul.mubr.msk.bf16.vlgmr.msra.gmra.mrb[12].mxu0 %vm139_vm2, %v1818_v32 }
 0x1f2   :  { %1477 = vmatpush3.bf16.xpose.msra.mxu1 %v438_v49  ;;  %1483 = vmatpush3.bf16.xpose.msra.mxu0 %v487_v50 }
 0x1f3   :  { %1478 = vmatprep.mubr.msk.bf16.mxu1 %vm1710_vm0, %v1709_v0  ;;  %1484 = vmatprep.mubr.msk.bf16.mxu0 %vm1710_vm0, %v1709_v0 }
 0x1f4   :  { %1488 = vmatprep.subr.bf16.mxu1 %v1709_v0  ;;  %1494 = vmatprep.subr.bf16.mxu0 %v1709_v0 }
 0x1f9   :  { %1479 = vmatmul.mubr.msk.bf16.vlgmr.msra.gmra.mrb[12].mxu1 %vm139_vm2, %v1828_v37  ;;  %1485 = vmatmul.mubr.msk.bf16.vlgmr.msra.gmra.mrb[16].mxu0 %vm139_vm2, %v1831_v38 }
 0x1fa   :  { %1489 = vmatpush3.bf16.msra.mxu1 %v632_v54  ;;  %1495 = vmatpush3.bf16.msra.mxu0 %v680_v53 }
 0x1fb   :  { %1490 = vmatprep.mubr.msk.bf16.mxu1 %vm1710_vm0, %v1709_v0  ;;  %1496 = vmatprep.mubr.msk.bf16.mxu0 %vm1710_vm0, %v1709_v0 }
 0x1fc   :  { %1500 = vmatprep.subr.bf16.mxu1 %v1709_v0  ;;  %1506 = vmatprep.subr.bf16.mxu0 %v1709_v0 }
 0x249   :  { %v180_v55 = vpop.f32.mrb[0].mxu1 }
 0x24a   :  { %v1444_v56 = vpop.f32.mrb[1].mxu1  ;;  %v529_v57 = vsel %vm139_vm2, %v180_v55, -inf }
 0x24b   :  { %v183_v58 = vpop.f32.mrb[2].mxu1  ;;  %530 = vmax.xlane.f32.xlu1 %v529_v57 }
 0x24c   :  { %v1445_v59 = vpop.f32.mrb[3].mxu1 }
 0x24d   :  { %v229_v60 = vpop.f32.mrb[4].mxu0 }
 0x24e   :  { %v1450_v61 = vpop.f32.mrb[5].mxu0  ;;  %v532_v62 = vsel %vm139_vm2, %v229_v60, -inf }
 0x24f   :  { %533 = vmax.xlane.f32.xlu0 %v532_v62  ;;  %v232_v63 = vpop.f32.mrb[6].mxu0 }
 0x250   :  { %v1451_v1 = vpop.f32.mrb[7].mxu0 }
 0x2bc   :  { %v278_v2 = vpop.f32.mrb[4].mxu1  ;;  %v327_v5 = vpop.f32.mrb[8].mxu0 }
 0x2bd   :  { %v1456_v6 = vpop.f32.mrb[5].mxu1  ;;  %v1462_v8 = vpop.f32.mrb[9].mxu0  ;;  %v535_v10 = vsel %vm139_vm2, %v278_v2, -inf  ;;  %v538_v11 = vsel %vm139_vm2, %v327_v5, -inf }
 0x2be   :  { %v281_v12 = vpop.f32.mrb[6].mxu1  ;;  %536 = vmax.xlane.f32.xlu0 %v535_v10  ;;  %539 = vmax.xlane.f32.xlu1 %v538_v11  ;;  %v330_v13 = vpop.f32.mrb[10].mxu0 }
 0x2bf   :  { %v1457_v14 = vpop.f32.mrb[7].mxu1  ;;  %v1463_v15 = vpop.f32.mrb[11].mxu0 }
 0x2c4   :  { %v1889_v16 = vpop.f32.mrb[8].mxu1  ;;  %v425_v17 = vpop.f32.mrb[12].mxu0 }
 0x2c5   :  { %v1468_v18 = vpop.f32.mrb[9].mxu1  ;;  %v1474_v19 = vpop.f32.mrb[13].mxu0  ;;  %v541_v20 = vsel %vm139_vm2, %v1889_v16, -inf  ;;  %v544_v21 = vsel %vm139_vm2, %v425_v17, -inf }
 0x2c6   :  { %v379_v22 = vpop.f32.mrb[10].mxu1  ;;  %542 = vmax.xlane.f32.xlu0 %v541_v20  ;;  %545 = vmax.xlane.f32.xlu1 %v544_v21  ;;  %v428_v23 = vpop.f32.mrb[14].mxu0 }
 0x2c7   :  { %v1469_v26 = vpop.f32.mrb[11].mxu1  ;;  %v1475_v27 = vpop.f32.mrb[15].mxu0 }
 0x2cc   :  { %v1894_v28 = vpop.f32.mrb[12].mxu1  ;;  %v523_v29 = vpop.f32.mrb[16].mxu0 }
 0x2cd   :  { %v1480_v30 = vpop.f32.mrb[13].mxu1  ;;  %v1486_v31 = vpop.f32.mrb[17].mxu0  ;;  %v547_v34 = vsel %vm139_vm2, %v1894_v28, -inf  ;;  %v550_v35 = vsel %vm139_vm2, %v523_v29, -inf }
 0x2ce   :  { %v477_v36 = vpop.f32.mrb[14].mxu1  ;;  %548 = vmax.xlane.f32.xlu0 %v547_v34  ;;  %551 = vmax.xlane.f32.xlu1 %v550_v35  ;;  %v526_v39 = vpop.f32.mrb[18].mxu0 }
 0x2cf   :  { %v1481_v40 = vpop.f32.mrb[15].mxu1  ;;  %v1487_v41 = vpop.f32.mrb[19].mxu0 }
 0x2d8   :  { %v531_v42 = vpop.xlane.xlu1 %530 }
 0x2d9   :  { %v553_v44 = vsub.f32 %v180_v55, %v531_v42 }
 0x2db   :  { %v561_v46 = vmul.f32 1.442695, %v553_v44 }
 0x2dc   :  { %v534_v43 = vpop.xlane.xlu0 %533 }
 0x2dd   :  { %v554_v45 = vsub.f32 %v229_v60, %v534_v43  ;;  %1618 = vpow2.f32 %v561_v46 }
 0x2df   :  { %722 = vrot.lane.b32.xlu1 %v1811_v25, %s1707_s7  ;;  %v563_v47 = vmul.f32 1.442695, %v554_v45 }
 0x2e1   :  { %1620 = vpow2.f32 %v563_v47 }
 0x2e4   :  { %770 = vrot.lane.b32.xlu0 %v1809_v24, %s1707_s7 }
 0x2e7   :  { %v1619_v48 = vpop.eup %1618 }
 0x2e8   :  { %v577_v50 = vsel %vm139_vm2, %v1619_v48, 0.0 }
 0x2eb   :  { %v1621_v49 = vpop.eup %1620 }
 0x2ec   :  { %v580_v51 = vsel %vm139_vm2, %v1621_v49, 0.0 }
 0x303   :  { %578 = vadd.xlane.f32.xlu0 %v577_v50  ;;  %581 = vadd.xlane.f32.xlu1 %v580_v51 }
 0x314   :  { %818 = vrot.lane.b32.xlu1 %v1820_v33, %s1707_s7 }
 0x34b   :  { %v537_v24 = vpop.xlane.xlu0 %536  ;;  %v540_v25 = vpop.xlane.xlu1 %539 }
 0x34c   :  { %v555_v52 = vsub.f32 %v278_v2, %v537_v24  ;;  %v556_v53 = vsub.f32 %v327_v5, %v540_v25 }
 0x34e   :  { %v565_v54 = vmul.f32 1.442695, %v555_v52  ;;  %v567_v55 = vmul.f32 1.442695, %v556_v53 }
 0x350   :  { %1622 = vpow2.f32 %v565_v54 }
 0x351   :  { %1624 = vpow2.f32 %v567_v55 }
 0x353   :  { %v546_v56 = vpop.xlane.xlu1 %545  ;;  %v543_v10 = vpop.xlane.xlu0 %542 }
 0x354   :  { %v558_v57 = vsub.f32 %v425_v17, %v546_v56  ;;  %v557_v11 = vsub.f32 %v1889_v16, %v543_v10 }
 0x356   :  { %v571_v58 = vmul.f32 1.442695, %v558_v57  ;;  %v569_v13 = vmul.f32 1.442695, %v557_v11 }
 0x358   :  { %1626 = vpow2.f32 %v571_v58 }
 0x35a   :  { %v1907_v59 = vpop.eup %1622 }
 0x35b   :  { %v1909_v60 = vpop.eup %1624  ;;  %v552_v61 = vpop.xlane.xlu1 %551  ;;  %v583_v33 = vsel %vm139_vm2, %v1907_v59, 0.0 }
 0x35c   :  { %v560_v62 = vsub.f32 %v523_v29, %v552_v61  ;;  %584 = vadd.xlane.f32.xlu0 %v583_v33  ;;  %v586_v63 = vsel %vm139_vm2, %v1909_v60, 0.0  ;;  %v549_v12 = vpop.xlane.xlu0 %548 }
 0x35d   :  { %587 = vadd.xlane.f32.xlu1 %v586_v63  ;;  %v559_v14 = vsub.f32 %v1894_v28, %v549_v12 }
 0x35e   :  { %v575_v1 = vmul.f32 1.442695, %v560_v62 }
 0x35f   :  { %v573_v15 = vmul.f32 1.442695, %v559_v14  ;;  %v723_v18 = vpop.permute.xlu1 %722 }
 0x360   :  { %1628 = vpow2.f32 %v575_v1  ;;  %v771_v17 = vpop.permute.xlu0 %770  ;;  %v728_v30 = vsel %vm630_vm3, %v723_v18, 0 }
 0x361   :  { %1630 = vpow2.f32 %v569_v13  ;;  %v776_v31 = vsel %vm630_vm3, %v771_v17, 0 }
 0x362   :  { %v1915_v2 = vpop.eup %1626  ;;  %1632 = vpow2.f32 %v573_v15 }
 0x363   :  { %v592_v5 = vsel %vm139_vm2, %v1915_v2, 0.0 }
 0x364   :  { %593 = vadd.xlane.f32.xlu1 %v592_v5 }
 0x36a   :  { %v1919_v6 = vpop.eup %1628 }
 0x36b   :  { %v598_v8 = vsel %vm139_vm2, %v1919_v6, 0.0  ;;  %v1929_v19 = vpop.eup %1630 }
 0x36c   :  { %599 = vadd.xlane.f32.xlu1 %v598_v8  ;;  %v1933_v16 = vpop.eup %1632 }
 0x372   :  { %866 = vrot.lane.b32.xlu0 %v1818_v32, %s1707_s7  ;;  %v589_v32 = vsel %vm139_vm2, %v1929_v19, 0.0 }
 0x37d   :  { %914 = vrot.lane.b32.xlu1 %v1828_v37, %s1707_s7  ;;  %v595_v37 = vsel %vm139_vm2, %v1933_v16, 0.0 }
 0x390   :  { %v579_v20 = vpop.xlane.xlu0 %578  ;;  %v582_v21 = vpop.xlane.xlu1 %581 }
 0x391   :  { %1634 = vrcp.f32 %v579_v20  ;;  %590 = vadd.xlane.f32.xlu0 %v589_v32 }
 0x392   :  { %1636 = vrcp.f32 %v582_v21 }
 0x394   :  { %v819_v34 = vpop.permute.xlu1 %818 }
 0x395   :  { %596 = vadd.xlane.f32.xlu0 %v595_v37  ;;  %v824_v47 = vsel %vm630_vm3, %v819_v34, 0  ;;  %v1611_v34 = vld [vmem:[%s2053_s2 + $0x8] sm:$0xff]  }
 0x39b   :  { %v1635_v22 = vpop.eup %1634 }
 0x39c   :  { %v1637_v23 = vpop.eup %1636  ;;  %v609_v26 = vmul.f32 %v1635_v22, %v1619_v48 }
 0x39d   :  { %v610_v27 = vmul.f32 %v1637_v23, %v1621_v49 }
 0x39e   :  { %v617_v28 = vpack.c.bf16 %v609_v26, %v609_v26  ;;  %v1610_v26 = vld [vmem:[%s2053_s2] sm:$0xff]  }
 0x39f   :  { %v618_v29 = vpack.c.bf16 %v610_v27, %v610_v27 }
 0x3a0   :  { %1491 = vmatmul.mubr.msk.bf16.vlgmr.msra.gmra.mrb[16].mxu1 %vm139_vm2, %v617_v28 }
 0x3a1   :  { %1497 = vmatmul.mubr.msk.bf16.vlgmr.msra.gmra.mrb[20].mxu0 %vm139_vm2, %v618_v29  ;;  %1501 = vmatpush3.bf16.msra.mxu1 %v728_v30 }
 0x3a2   :  { %1507 = vmatpush3.bf16.msra.mxu0 %v776_v31  ;;  %1502 = vmatprep.mubr.msk.bf16.mxu1 %vm1710_vm0, %v1709_v0 }
 0x3a3   :  { %1508 = vmatprep.mubr.msk.bf16.mxu0 %vm1710_vm0, %v1709_v0  ;;  %1512 = vmatprep.subr.bf16.mxu1 %v1709_v0 }
 0x3a4   :  { %1518 = vmatprep.subr.bf16.mxu0 %v1709_v0 }
 0x3ab   :  { %962 = vrot.lane.b32.xlu0 %v1831_v38, %s1707_s7 }
 0x3e9   :  { %v585_v35 = vpop.xlane.xlu0 %584 }
 0x3ea   :  { %1638 = vrcp.f32 %v585_v35  ;;  %v588_v36 = vpop.xlane.xlu1 %587 }
 0x3eb   :  { %1640 = vrcp.f32 %v588_v36 }
 0x3ed   :  { %v867_v44 = vpop.permute.xlu0 %866 }
 0x3ee   :  { %v872_v38 = vsel %vm630_vm3, %v867_v44, 0 }
 0x3f1   :  { %v594_v39 = vpop.xlane.xlu1 %593 }
 0x3f2   :  { %1642 = vrcp.f32 %v594_v39 }
 0x3f4   :  { %v1639_v40 = vpop.eup %1638 }
 0x3f5   :  { %v1641_v41 = vpop.eup %1640  ;;  %v611_v42 = vmul.f32 %v1639_v40, %v1907_v59 }
 0x3f6   :  { %v612_v43 = vmul.f32 %v1641_v41, %v1909_v60 }
 0x3f7   :  { %v619_v45 = vpack.c.bf16 %v611_v42, %v611_v42 }
 0x3f8   :  { %v620_v46 = vpack.c.bf16 %v612_v43, %v612_v43 }
 0x3f9   :  { %1503 = vmatmul.mubr.msk.bf16.vlgmr.msra.gmra.mrb[20].mxu1 %vm139_vm2, %v619_v45  ;;  %v600_v51 = vpop.xlane.xlu1 %599 }
 0x3fa   :  { %1509 = vmatmul.mubr.msk.bf16.vlgmr.msra.gmra.mrb[24].mxu0 %vm139_vm2, %v620_v46  ;;  %1513 = vmatpush3.bf16.msra.mxu1 %v824_v47  ;;  %1644 = vrcp.f32 %v600_v51 }
 0x3fb   :  { %1519 = vmatpush3.bf16.msra.mxu0 %v872_v38  ;;  %1520 = vmatprep.mubr.msk.bf16.mxu0 %vm1710_vm0, %v1709_v0 }
 0x3fc   :  { %1530 = vmatprep.subr.bf16.mxu0 %v1709_v0  ;;  %1514 = vmatprep.mubr.msk.bf16.mxu1 %vm1710_vm0, %v1709_v0  ;;  %v1643_v48 = vpop.eup %1642 }
 0x3fd   :  { %1524 = vmatprep.subr.bf16.mxu1 %v1709_v0  ;;  %v614_v49 = vmul.f32 %v1643_v48, %v1915_v2  ;;  %v915_v59 = vpop.permute.xlu1 %914 }
 0x3fe   :  { %v920_v33 = vsel %vm630_vm3, %v915_v59, 0  ;;  %v1049_v59 = vsub.s32 1, %v1798_v7 }
 0x3ff   :  { %v622_v50 = vpack.c.bf16 %v614_v49, %v614_v49 }
 0x402   :  { %1521 = vmatmul.mubr.msk.bf16.vlgmr.msra.gmra.mrb[28].mxu0 %vm139_vm2, %v622_v50 }
 0x403   :  { %1532 = vmatprep.mubr.msk.bf16.mxu0 %vm1710_vm0, %v1709_v0 }
 0x404   :  { %v1645_v25 = vpop.eup %1644 }
 0x405   :  { %v616_v53 = vmul.f32 %v1645_v25, %v1919_v6 }
 0x407   :  { %v624_v57 = vpack.c.bf16 %v616_v53, %v616_v53 }
 0x41e   :  { %v591_v24 = vpop.xlane.xlu0 %590 }
 0x41f   :  { %1646 = vrcp.f32 %v591_v24 }
 0x422   :  { %v597_v52 = vpop.xlane.xlu0 %596 }
 0x423   :  { %1648 = vrcp.f32 %v597_v52 }
 0x426   :  { %v963_v54 = vpop.permute.xlu0 %962 }
 0x427   :  { %v968_v55 = vsel %vm630_vm3, %v963_v54, 0 }
 0x428   :  { %1531 = vmatpush3.bf16.msra.mxu0 %v968_v55 }
 0x429   :  { %v1647_v56 = vpop.eup %1646  ;;  %1544 = vmatprep.subr.bf16.mxu0 %v1709_v0 }
 0x42a   :  { %v613_v58 = vmul.f32 %v1647_v56, %v1929_v19 }
 0x42b   :  { %1533 = vmatmul.mubr.msk.bf16.vlgmr.msra.gmra.mrb[32].mxu0 %vm139_vm2, %v624_v57 }
 0x42c   :  { %v621_v60 = vpack.c.bf16 %v613_v58, %v613_v58  ;;  %1548 = vmatprep.mubr.msk.bf16.mxu0 %vm1710_vm0, %v1709_v0 }
 0x42d   :  { %v1649_v61 = vpop.eup %1648 }
 0x42e   :  { %1515 = vmatmul.mubr.msk.bf16.vlgmr.msra.gmra.mrb[24].mxu1 %vm139_vm2, %v621_v60  ;;  %v615_v62 = vmul.f32 %v1649_v61, %v1933_v16  ;;  %v1050_v60 = vrot.slane %v1804_v9, %v1049_v59 }
 0x42f   :  { %1525 = vmatpush3.bf16.msra.mxu1 %v920_v33  ;;  %1526 = vmatprep.mubr.msk.bf16.mxu1 %vm1710_vm0, %v1709_v0 }
 0x430   :  { %1536 = vmatprep.subr.bf16.mxu1 %v1709_v0  ;;  %v623_v63 = vpack.c.bf16 %v615_v62, %v615_v62 }
 0x436   :  { %1527 = vmatmul.mubr.msk.bf16.vlgmr.msra.gmra.mrb[28].mxu1 %vm139_vm2, %v623_v63 }
 0x437   :  { %1540 = vmatprep.mubr.msk.bf16.mxu1 %vm1710_vm0, %v1709_v0  ;;  %1537 = vmatpush3.bf16.msra.mxu1 %v1610_v26 }
 0x438   :  { %1538 = vmatprep.subr.bf16.mxu1 %v1709_v0 }
 0x43b   :  { %1539 = vmatpush3.bf16.msra.mxu1 %v1611_v34 }
 0x43c   :  { %1552 = vmatprep.subr.bf16.mxu1 %v1709_v0 }
 0x473   :  { %v668_v1 = vpop.f32.mrb[16].mxu1 }
 0x474   :  { %v716_v2 = vpop.f32.mrb[20].mxu0  ;;  %v1492_v5 = vpop.f32.mrb[17].mxu1 }
 0x475   :  { %v1498_v6 = vpop.f32.mrb[21].mxu0  ;;  %v671_v8 = vpop.f32.mrb[18].mxu1 }
 0x476   :  { %v719_v10 = vpop.f32.mrb[22].mxu0  ;;  %v1493_v11 = vpop.f32.mrb[19].mxu1 }
 0x477   :  { %v1499_v12 = vpop.f32.mrb[23].mxu0 }
 0x4cc   :  { %v764_v13 = vpop.f32.mrb[20].mxu1 }
 0x4cd   :  { %v812_v14 = vpop.f32.mrb[24].mxu0  ;;  %v1504_v15 = vpop.f32.mrb[21].mxu1 }
 0x4ce   :  { %v1593_v17 = vpack.i.bf16 %v812_v14, %v764_v13  ;;  %v1510_v18 = vpop.f32.mrb[25].mxu0  ;;  %v767_v19 = vpop.f32.mrb[22].mxu1 }
 0x4cf   :  { %v815_v20 = vpop.f32.mrb[26].mxu0  ;;  %v1505_v21 = vpop.f32.mrb[23].mxu1 }
 0x4d0   :  { %1594 = vrot.lane.b32.xlu1 %v1593_v17, %s1715_s5  ;;  %v1511_v32 = vpop.f32.mrb[27].mxu0  ;;  %v1612_v21 = vld [vmem:[#allocation2] sm:$0xff]  }
 0x4d1   :  { %1545 = vmatpush3.bf16.msra.mxu0 %v1612_v21  ;;  %v1614_v32 = vld [vmem:[%s2055_s4] sm:$0xff]  }
 0x4d2   :  { %1546 = vmatprep.subr.bf16.mxu0 %v1709_v0 }
 0x4d5   :  { %v908_v16 = vpop.f32.mrb[28].mxu0 }
 0x4d6   :  { %v1522_v37 = vpop.f32.mrb[29].mxu0 }
 0x4d7   :  { %v911_v22 = vpop.f32.mrb[30].mxu0 }
 0x4d8   :  { %v1523_v23 = vpop.f32.mrb[31].mxu0 }
 0x4fe   :  { %v1004_v27 = vpop.f32.mrb[32].mxu0 }
 0x4ff   :  { %v1534_v28 = vpop.f32.mrb[33].mxu0 }
 0x500   :  { %v1007_v29 = vpop.f32.mrb[34].mxu0 }
 0x501   :  { %v860_v30 = vpop.f32.mrb[24].mxu1  ;;  %v1535_v31 = vpop.f32.mrb[35].mxu0  ;;  %v1138_v29 = vsub.s32 4, %v1798_v7 }
 0x502   :  { %v1598_v35 = vpack.i.bf16 %v908_v16, %v860_v30  ;;  %v1516_v36 = vpop.f32.mrb[25].mxu1  ;;  %v1615_v16 = vld [vmem:[%s2055_s4 + $0x8] sm:$0xff]  }
 0x503   :  { %v863_v39 = vpop.f32.mrb[26].mxu1  ;;  %v1139_v31 = vrot.slane %v1804_v9, %v1138_v29 }
 0x504   :  { %v1517_v40 = vpop.f32.mrb[27].mxu1  ;;  %1599 = vrot.lane.b32.xlu0 %v1598_v35, %s1716_s26  ;;  %v1144_v35 = vsub.s32 5, %v1798_v7 }
 0x509   :  { %v956_v41 = vpop.f32.mrb[28].mxu1 }
 0x50a   :  { %v1603_v42 = vpack.i.bf16 %v1004_v27, %v956_v41  ;;  %v1528_v43 = vpop.f32.mrb[29].mxu1  ;;  %v1145_v41 = vrot.slane %v1804_v9, %v1144_v35 }
 0x50b   :  { %v959_v44 = vpop.f32.mrb[30].mxu1 }
 0x50c   :  { %v1529_v45 = vpop.f32.mrb[31].mxu1  ;;  %1604 = vrot.lane.b32.xlu1 %v1603_v42, %s1717_s27 }
 0x542   :  { %v1595_v46 = vpop.permute.xlu1 %1594 }
 0x543   :  { %v1597_v38 = vunpack.i.h.bf16 %v1595_v46  ;;  %v1596_v48 = vunpack.i.l.bf16 %v1595_v46  ;;  %v1616_v46 = vld [vmem:[%s2055_s4 + $0x10] sm:$0xff]  }
 0x545   :  { %v1035_v24 = vsel %vm139_vm2, %v716_v2, %v1597_v38  ;;  %v1034_v25 = vsel %vm139_vm2, %v668_v1, %v1596_v48  ;;  %v1155_v38 = vsub.s32 2, %v1798_v7 }
 0x547   :  { %v1156_v48 = vrot.slane %v1804_v9, %v1155_v38 }
 0x576   :  { %v1600_v47 = vpop.permute.xlu0 %1599 }
 0x577   :  { %v1602_v49 = vunpack.i.h.bf16 %v1600_v47  ;;  %v1601_v50 = vunpack.i.l.bf16 %v1600_v47  ;;  %v1617_v47 = vld [vmem:[%s2055_s4 + $0x18] sm:$0xff]   ;;  %s1718_s4 = smov [#allocation5]  }
 0x578   :  { %s1344_s11 = sshll.u32 %s1718_s4, 4  ;;  %s1345_s11 = int_to_ptr.vmem [resolvable:$true] %s1344_s11 }
 0x579   :  { %v1038_v54 = vsel %vm1036_vm4, %v1035_v24, %v1602_v49  ;;  %v1037_v55 = vsel %vm1036_vm4, %v1034_v25, %v1601_v50  ;;  %s1680_s12 = scalar_lea.vmem %s1345_s11, 256  ;;  %p1685_p9 = scmp.lt.s32.totalorder %s1345_s11, %s1345_s11 }
 0x57a   :  { %p1681_p8 = scmp.ne.s32.totalorder %s1345_s11, %s1680_s12  ;;  %p1686_p10 = scmp.lt.s32.totalorder %s1680_s12, %s1680_s12 }
 0x57c   :  { %p1687_p11 = por %p1686_p10, %p1685_p9 }
 0x57e   :  { %v1605_v51 = vpop.permute.xlu1 %1604  ;;  %p1688_p12 = pnand %p1687_p11, %p1681_p8 }
 0x57f   :  { %v1607_v52 = vunpack.i.h.bf16 %v1605_v51  ;;  %v1606_v53 = vunpack.i.l.bf16 %v1605_v51 }
 0x581   :  { %v1041_v56 = vsel %vm1039_vm5, %v1038_v54, %v1607_v52  ;;  %v1040_v57 = vsel %vm1039_vm5, %v1037_v55, %v1606_v53 }
 0x582   :  { %v1042_v58 = vpack.c.bf16 %v1041_v56, %v1040_v57 }
 0x584   :  { %1541 = vmatmul.mubr.msk.bf16.vlgmr.msra.gmra.mrb[32].mxu1 %vm63_vm1, %v1042_v58 }
 0x585   :  { %1560 = vmatprep.mubr.msk.bf16.mxu1 %vm1710_vm0, %v1709_v0  ;;  %1553 = vmatpush3.bf16.msra.mxu1 %v1614_v32  ;;  %v1327_v32 = vsub.s32 6, %v1798_v7 }
 0x586   :  { %1554 = vmatprep.subr.bf16.mxu1 %v1709_v0 }
 0x589   :  { %1555 = vmatpush3.bf16.msra.mxu1 %v1615_v16  ;;  %v1333_v16 = vsub.s32 7, %v1798_v7 }
 0x58a   :  { %1556 = vmatprep.subr.bf16.mxu1 %v1709_v0 }
 0x58d   :  { %1557 = vmatpush3.bf16.msra.mxu1 %v1616_v46 }
 0x58e   :  { %1558 = vmatprep.subr.bf16.mxu1 %v1709_v0  ;;  %v1226_v0 = vsub.s32 3, %v1798_v7 }
 0x590   :  { %v1227_v56 = vrot.slane %v1804_v9, %v1226_v0 }
 0x591   :  { %1559 = vmatpush3.bf16.msra.mxu1 %v1617_v47 }
 0x657   :  { %v1100_v61 = vpop.f32.mrb[32].mxu1 }
 0x658   :  { %v1101_v33 = vadd.f32 %v1100_v61, %v1050_v60  ;;  %v1542_v62 = vpop.f32.mrb[33].mxu1 }
 0x659   :  { %v1103_v63 = vpop.f32.mrb[34].mxu1 }
 0x65a   :  { %v1104_v1 = vadd.f32 %v1103_v63, %v1050_v60  ;;  %v1543_v2 = vpop.f32.mrb[35].mxu1  ;;  %v1107_v5 = vadd.f32 %v1101_v33, %v1784_v3 }
 0x65c   :  { %v1109_v6 = vsel %vm63_vm1, %v1107_v5, 0.0  ;;  %v1108_v8 = vadd.f32 %v1104_v1, %v1789_v4  ;;  %v1613_v4 = vld [vmem:[#allocation2 + $0x8] sm:$0xff]  }
 0x65d   :  { %1110 = vadd.xlane.f32.xlu0 %v1109_v6  ;;  %1547 = vmatpush3.bf16.msra.mxu0 %v1613_v4 }
 0x65e   :  { %v1112_v10 = vsel %vm63_vm1, %v1108_v8, 0.0 }
 0x65f   :  { %1113 = vadd.xlane.f32.xlu1 %v1112_v10 }
 0x6ea   :  { %v1111_v11 = vpop.xlane.xlu0 %1110 }
 0x6eb   :  { %v1116_v12 = vmul.f32 0.03125, %v1111_v11 }
 0x6ec   :  { %v1114_v13 = vpop.xlane.xlu1 %1113 }
 0x6ed   :  { %v1118_v14 = vsub.f32 %v1107_v5, %v1116_v12  ;;  %v1117_v15 = vmul.f32 0.03125, %v1114_v13 }
 0x6ef   :  { %v1119_v17 = vsub.f32 %v1108_v8, %v1117_v15  ;;  %v1120_v18 = vmul.f32 %v1118_v14, %v1118_v14 }
 0x6f1   :  { %v1122_v19 = vsel %vm63_vm1, %v1120_v18, 0.0  ;;  %v1121_v20 = vmul.f32 %v1119_v17, %v1119_v17 }
 0x6f2   :  { %1123 = vadd.xlane.f32.xlu0 %v1122_v19 }
 0x6f3   :  { %v1125_v3 = vsel %vm63_vm1, %v1121_v20, 0.0 }
 0x6f6   :  { %1126 = vadd.xlane.f32.xlu0 %v1125_v3 }
 0x77f   :  { %v1124_v37 = vpop.xlane.xlu0 %1123 }
 0x780   :  { %v1128_v22 = vmul.f32 0.03125, %v1124_v37  ;;  %v1328_v37 = vrot.slane %v1804_v9, %v1327_v32 }
 0x782   :  { %v1130_v23 = vadd.f32 1e-05, %v1128_v22 }
 0x783   :  { %v1127_v26 = vpop.xlane.xlu0 %1126 }
 0x784   :  { %1650 = vrsqrt.f32 %v1130_v23  ;;  %v1129_v27 = vmul.f32 0.03125, %v1127_v26  ;;  %v1334_v26 = vrot.slane %v1804_v9, %v1333_v16 }
 0x786   :  { %v1131_v28 = vadd.f32 1e-05, %v1129_v27 }
 0x788   :  { %1652 = vrsqrt.f32 %v1131_v28 }
 0x78e   :  { %v1651_v30 = vpop.eup %1650 }
 0x78f   :  { %v1134_v34 = vmul.f32 %v1651_v30, %v1118_v14 }
 0x791   :  { %v1140_v39 = vmul.f32 %v1139_v31, %v1134_v34 }
 0x792   :  { %v1653_v36 = vpop.eup %1652 }
 0x793   :  { %v1135_v40 = vmul.f32 %v1653_v36, %v1119_v17  ;;  %v1146_v43 = vadd.f32 %v1145_v41, %v1140_v39 }
 0x795   :  { %v1141_v42 = vmul.f32 %v1139_v31, %v1135_v40 }
 0x797   :  { %v1147_v44 = vadd.f32 %v1145_v41, %v1141_v42 }
 0x799   :  { %v1148_v45 = vpack.c.bf16 %v1147_v44, %v1146_v43 }
 0x79b   :  { %1549 = vmatmul.mubr.msk.bf16.vlgmr.msra.gmra.mrb[36].mxu0 %vm63_vm1, %v1148_v45 }
 0x86e   :  { %v1206_v49 = vpop.f32.mrb[36].mxu0 }
 0x86f   :  { %v1207_v50 = vadd.f32 %v1206_v49, %v1156_v48  ;;  %v1550_v51 = vpop.f32.mrb[37].mxu0 }
 0x870   :  { %v1209_v24 = vpop.f32.mrb[38].mxu0 }
 0x871   :  { %v1210_v25 = vadd.f32 %v1209_v24, %v1156_v48  ;;  %v1551_v52 = vpop.f32.mrb[39].mxu0  ;;  %v1213_v53 = vmax.f32 %v1207_v50, 0.0 }
 0x873   :  { %v1214_v54 = vmax.f32 %v1210_v25, 0.0 }
 0x875   :  { %v1215_v55 = vpack.c.bf16 %v1214_v54, %v1213_v53 }
 0x877   :  { %1561 = vmatmul.mubr.msk.bf16.vlgmr.msra.gmra.mrb[36].mxu1 %vm1252_vm6, %v1215_v55 }
 0x94a   :  { %v1290_v57 = vpop.f32.mrb[36].mxu1 }
 0x94b   :  { %v1291_v58 = vadd.f32 %v1290_v57, %v1227_v56  ;;  %v1562_v59 = vpop.f32.mrb[37].mxu1 }
 0x94c   :  { %v1293_v60 = vpop.f32.mrb[38].mxu1 }
 0x94d   :  { %v1294_v61 = vadd.f32 %v1293_v60, %v1227_v56  ;;  %v1563_v33 = vpop.f32.mrb[39].mxu1  ;;  %v1297_v62 = vadd.f32 %v1291_v58, %v1146_v43 }
 0x94f   :  { %v1299_v63 = vsel %vm63_vm1, %v1297_v62, 0.0  ;;  %v1298_v1 = vadd.f32 %v1294_v61, %v1147_v44 }
 0x950   :  { %1300 = vadd.xlane.f32.xlu1 %v1299_v63 }
 0x951   :  { %v1302_v2 = vsel %vm63_vm1, %v1298_v1, 0.0 }
 0x952   :  { %1303 = vadd.xlane.f32.xlu0 %v1302_v2 }
 0x9dd   :  { %v1301_v5 = vpop.xlane.xlu1 %1300 }
 0x9de   :  { %v1305_v6 = vmul.f32 0.03125, %v1301_v5 }
 0x9df   :  { %v1304_v8 = vpop.xlane.xlu0 %1303 }
 0x9e0   :  { %v1307_v10 = vsub.f32 %v1297_v62, %v1305_v6  ;;  %v1306_v11 = vmul.f32 0.03125, %v1304_v8 }
 0x9e2   :  { %v1308_v12 = vsub.f32 %v1298_v1, %v1306_v11  ;;  %v1309_v13 = vmul.f32 %v1307_v10, %v1307_v10 }
 0x9e4   :  { %v1311_v14 = vsel %vm63_vm1, %v1309_v13, 0.0  ;;  %v1310_v15 = vmul.f32 %v1308_v12, %v1308_v12 }
 0x9e5   :  { %1312 = vadd.xlane.f32.xlu1 %v1311_v14 }
 0x9e6   :  { %v1314_v17 = vsel %vm63_vm1, %v1310_v15, 0.0 }
 0x9e7   :  { %1315 = vadd.xlane.f32.xlu0 %v1314_v17 }
 0xa72   :  { %v1313_v18 = vpop.xlane.xlu1 %1312 }
 0xa73   :  { %v1317_v19 = vmul.f32 0.03125, %v1313_v18 }
 0xa74   :  { %v1316_v20 = vpop.xlane.xlu0 %1315 }
 0xa75   :  { %v1319_v3 = vadd.f32 1e-05, %v1317_v19  ;;  %v1318_v21 = vmul.f32 0.03125, %v1316_v20 }
 0xa77   :  { %1654 = vrsqrt.f32 %v1319_v3  ;;  %v1320_v4 = vadd.f32 1e-05, %v1318_v21 }
 0xa79   :  { %1656 = vrsqrt.f32 %v1320_v4 }
 0xa81   :  { %v1655_v22 = vpop.eup %1654 }
 0xa82   :  { %v1323_v23 = vmul.f32 %v1655_v22, %v1307_v10 }
 0xa83   :  { %v1657_v27 = vpop.eup %1656 }
 0xa84   :  { %v1329_v28 = vmul.f32 %v1328_v37, %v1323_v23  ;;  %v1324_v29 = vmul.f32 %v1657_v27, %v1308_v12 }
 0xa86   :  { %v1330_v30 = vmul.f32 %v1328_v37, %v1324_v29  ;;  %v1335_v31 = vadd.f32 %v1334_v26, %v1329_v28 }
 0xa88   :  { %v1336_v34 = vadd.f32 %v1334_v26, %v1330_v30  ;;  %1337 = vst.msk [vmem:[#allocation5] sm:$0xff] %vm63_vm1, %v1335_v31 }
 0xa8a   :  { %1338 = vst.msk [vmem:[#allocation5 + $0x8] sm:$0xff] %vm63_vm1, %v1336_v34 }
 0xa8b   :  { %1691 = shalt.err (!%p1688_p12)
}
 0xa8c   :  { %s1692_s14 = scalar_lea.hbm %s2057_s6, 256 }
 0xa8d   :  { %p1693_p13 = scmp.ne.s32.totalorder %s2057_s6, %s1692_s14  ;;  %p1696_p0 = scmp.lt.u32.totalorder %s1692_s14, %s2057_s6 }
 0xa8f   :  { %p1698_p1 = pnand %p1696_p0, %p1693_p13 }
 0xa91   :  { %1701 = shalt.err (!%p1698_p1)
}
 0xa92   :  { %s1719_s1 = smov 128  }
 0xa93   :  { %1350 = dma.vmem_to_hbm [thread:$0]  %s1345_s11, 256, %s2057_s6, [#allocation4], %s1719_s1, %s1719_s1, %s1715_s5  }
 0xa94   :  { %1704 = dma.done.wait [#allocation4], 256  }
 0xa95   :  { %1705 = vsyncadd [#allocation4], 4294967040 }
 0xa96   :  { %1354 = vsyncpa [#allocation3], 1 }
 0xa97   :  { %1355 = vsyncpa [#allocation4], 1 }

</bundles_post_ra>
